<compile_context>
chip_gen: v7x
topology: tpu7x:2x2x1
jax: 0.10.0
libtpu: 0.0.40
codegen_flags: <defaults>
</compile_context>

<pallas_src>
import functools

import jax
import jax.numpy as jnp
from jax.experimental import pallas as pl
from jax.experimental.pallas import tpu as pltpu


def _round_up(x, m):
    return (x + m - 1) // m * m


def _cdiv(a, b):
    return -(-a // b)


# ----------------------------------------------------------------------------
# Kernel bodies
# ----------------------------------------------------------------------------
def _pff_kernel_vpu(x_ref, w_ref, b_ref, o_ref):
    """Tiny-d_in path: unrolled VPU broadcast-FMA (no MXU)."""
    x = x_ref[...].astype(jnp.float32)          # (tm, d_in), d_in <= 32
    w = w_ref[...].astype(jnp.float32)          # (d_in, tn)
    acc = x[:, 0:1] * w[0:1, :]
    for k in range(1, x.shape[1]):              # static unroll
        acc = acc + x[:, k:k + 1] * w[k:k + 1, :]
    o_ref[...] = (acc + b_ref[...]).astype(o_ref.dtype)


def _pff_kernel_mxu(x_ref, w_ref, b_ref, o_ref, *, cdt):
    """MXU path, full contraction dim in one block."""
    xv = x_ref[...]
    if cdt is not None:
        xv = xv.astype(cdt)                     # in-VMEM cast: no HBM change
    acc = jnp.dot(xv, w_ref[...], preferred_element_type=jnp.float32)
    o_ref[...] = (acc + b_ref[...]).astype(o_ref.dtype)


def _pff_kernel_mxu_ktiled(x_ref, w_ref, b_ref, o_ref, acc_ref, *, cdt):
    """MXU path with a K (d_in) grid axis and an f32 accumulator scratch."""
    k = pl.program_id(2)

    @pl.when(k == 0)
    def _():
        acc_ref[...] = jnp.zeros_like(acc_ref)

    xv = x_ref[...]
    if cdt is not None:
        xv = xv.astype(cdt)
    acc_ref[...] += jnp.dot(xv, w_ref[...], preferred_element_type=jnp.float32)

    @pl.when(k == pl.num_programs(2) - 1)
    def _():
        o_ref[...] = (acc_ref[...] + b_ref[...]).astype(o_ref.dtype)


# ----------------------------------------------------------------------------
# Wrapper
# ----------------------------------------------------------------------------
def position_feed_forward(x, w, b, *, compute_dtype=None, out_dtype=None,
                          _force_tiles=None):
    """y[n, l, :] = x[n, l, :] @ W + b  (PositionFeedForward forward pass).

    x: (N, L, d_in)   -- never copied/padded here; pass it in bf16 if you want
                         the input-bandwidth win.
    w: (d_in, d_out)  -- PyTorch Conv1d weight[:, :, 0].T
    b: (d_out,)
    compute_dtype: optional MXU input dtype (e.g. jnp.bfloat16).
    out_dtype: optional output dtype (e.g. jnp.bfloat16) to halve writeback.
    _force_tiles: (tm, tn, tk) override, used to exercise the tiled paths.
    """
    N, L, d_in = x.shape
    d_in_w, d_out = w.shape
    assert d_in_w == d_in and b.shape == (d_out,)

    out_dtype = jnp.dtype(x.dtype if out_dtype is None else out_dtype)
    cdt = None if compute_dtype is None else jnp.dtype(compute_dtype)
    w_store_dtype = jnp.dtype(w.dtype) if cdt is None else cdt

    x_bytes = jnp.dtype(x.dtype).itemsize
    w_bytes = w_store_dtype.itemsize
    o_bytes = out_dtype.itemsize

    M = N * L
    d_out_p = _round_up(d_out, 128)             # lane-dense output stores

    def _native_sublane(nbytes):
        return 8 if nbytes >= 4 else (16 if nbytes == 2 else 32)
    tm_align = max(_native_sublane(x_bytes), _native_sublane(o_bytes))

    # ---- generation-aware VMEM policy --------------------------------------
    vmem_cap = 64 * 1024 * 1024                  # safe floor (v7x per-TC)
    try:
        vmem_cap = int(getattr(pltpu.get_tpu_info(), "vmem_capacity_bytes",
                               vmem_cap))
    except Exception:
        pass
    # Never request the physical ceiling; leave headroom for Mosaic scratch.
    # v7x (64 MiB) -> 48 MiB; v5e/v6e (128 MiB) -> 96 MiB.
    vmem_limit = min(vmem_cap * 3 // 4, 100 * 1024 * 1024)
    budget = vmem_limit - 2 * 1024 * 1024        # tiles derived from the limit

    # ---- tile selection -----------------------------------------------------
    if _force_tiles is not None:
        tm, tn, tk = _force_tiles
        assert tm % 8 == 0 and tn % 128 == 0
        assert d_out_p % tn == 0 and d_in % tk == 0
    else:
        w_budget = max(budget // 2, 4 * 1024 * 1024)
        if 2 * d_in * d_out_p * w_bytes <= w_budget:
            tn, tk = d_out_p, d_in               # whole weight VMEM-resident
        else:
            # Column-tile d_out: largest 128-multiple divisor of d_out_p that
            # fits the weight share of the budget (double-buffered).
            cap = max(128, (w_budget // (2 * d_in * w_bytes)) // 128 * 128)
            tn = 128
            for cand in range(min(cap, d_out_p), 127, -128):
                if d_out_p % cand == 0:
                    tn = cand
                    break
            tk = d_in
            if 2 * d_in * tn * w_bytes > w_budget:
                # Even a 128-wide column of the full-K weight is too big:
                # add a K grid axis.  tk must be a 128-multiple divisor of
                # d_in so the contraction never touches OOB garbage.
                tn = 128
                max_tk = max(128, (w_budget // (2 * tn * w_bytes)) // 128 * 128)
                tk = 0
                for cand in range(min(max_tk, d_in), 127, -128):
                    if d_in % cand == 0:
                        tk = cand
                        break
                if tk == 0:
                    # TODO(synk): d_in has no 128-multiple divisor that fits;
                    # fall back to full-K (may force a tiny tm / spills).
                    tk = d_in

        # Row tile from the remaining budget: double-buffered x / out blocks,
        # double-buffered weight & bias blocks, + f32 accumulator if K-tiled.
        # TODO(synk): when the weight block index is constant over the grid,
        # pipeline_mode=pl.Buffered(1) on its BlockSpec would halve its VMEM.
        n_k = d_in // tk
        fixed = 2 * tk * tn * w_bytes + 2 * tn * 4
        per_row = 2 * tk * x_bytes + 2 * tn * o_bytes + (tn * 4 if n_k > 1 else 0)
        tm = (budget - fixed) // per_row
        tm = max(tm_align, min(int(tm), 2048, _round_up(M, tm_align)))
        tm = tm // tm_align * tm_align
        # Balance row tiles so the masked tail tile is not mostly empty.
        n_i = _cdiv(M, tm)
        tm = _round_up(_cdiv(M, n_i), tm_align)

    ni = _cdiv(M, tm)                            # ragged tail handled by masking
    nj = d_out_p // tn
    nk = d_in // tk
    use_vpu = (d_in <= 32) and nk == 1 and tk == d_in

    # ---- operands (x untouched; W / b are tiny) -----------------------------
    x2d = x.reshape(M, d_in)                     # metadata-only under jit
    w_p = w if w.dtype == w_store_dtype else w.astype(w_store_dtype)
    b_p = b.astype(jnp.float32).reshape(1, d_out)
    if d_out_p != d_out:
        w_p = jnp.pad(w_p, ((0, 0), (0, d_out_p - d_out)))
        b_p = jnp.pad(b_p, ((0, 0), (0, d_out_p - d_out)))

    # ---- grid / specs -------------------------------------------------------
    if nk == 1:
        grid = (ni, nj)
        in_specs = [
            pl.BlockSpec((tm, d_in), lambda i, j: (i, 0)),     # x rows
            pl.BlockSpec((d_in, tn), lambda i, j: (0, j)),     # weight cols
            pl.BlockSpec((1, tn), lambda i, j: (0, j)),        # bias cols
        ]
        out_spec = pl.BlockSpec((tm, tn), lambda i, j: (i, j))
        scratch = []
        dims = ("parallel", "parallel")
        kernel = (_pff_kernel_vpu if use_vpu
                  else functools.partial(_pff_kernel_mxu, cdt=cdt))
    else:
        grid = (ni, nj, nk)
        in_specs = [
            pl.BlockSpec((tm, tk), lambda i, j, k: (i, k)),
            pl.BlockSpec((tk, tn), lambda i, j, k: (k, j)),
            pl.BlockSpec((1, tn), lambda i, j, k: (0, j)),
        ]
        out_spec = pl.BlockSpec((tm, tn), lambda i, j, k: (i, j))
        scratch = [pltpu.VMEM((tm, tn), jnp.float32)]
        dims = ("parallel", "parallel", "arbitrary")
        kernel = functools.partial(_pff_kernel_mxu_ktiled, cdt=cdt)

    # Honest traffic estimate: x re-read per column tile, weight re-streamed
    # per row tile unless it is fully resident.
    w_streams = 1 if (nj == 1 and nk == 1) else ni
    cost = pl.CostEstimate(
        flops=2 * M * d_in * d_out_p,
        transcendentals=0,
        bytes_accessed=int(M * d_in * x_bytes * nj
                           + d_in * d_out_p * w_bytes * w_streams
                           + M * d_out_p * o_bytes
                           + d_out_p * 4),
    )

    out2d = pl.pallas_call(
        kernel,
        out_shape=jax.ShapeDtypeStruct((M, d_out_p), out_dtype),
        grid_spec=pltpu.PrefetchScalarGridSpec(
            num_scalar_prefetch=0,
            grid=grid,
            in_specs=in_specs,
            out_specs=out_spec,
            scratch_shapes=scratch,
        ),
        compiler_params=pltpu.CompilerParams(
            dimension_semantics=dims,
            vmem_limit_bytes=int(vmem_limit),
        ),
        cost_estimate=cost,
    )(x2d, w_p, b_p)

    if d_out_p != d_out:
        out2d = out2d[:, :d_out]
    return out2d.reshape(N, L, d_out)


# ----------------------------------------------------------------------------
# Self-test
# ----------------------------------------------------------------------------
if __name__ == "__main__":
    HI = jax.lax.Precision.HIGHEST

    # 1) Module-implied small shapes; tiny d_in exercises the VPU FMA path,
    #    d_out=32 exercises the lane-dense (128) output padding + slice.
    N, L, d_in, d_out = 2, 8, 4, 32
    kx, kw, kb = jax.random.split(jax.random.PRNGKey(0), 3)
    x = jax.random.normal(kx, (N, L, d_in), dtype=jnp.float32)
    # Conv1d weight (d_out, d_in, 1) is equivalent to W: (d_in, d_out)
    w = jax.random.normal(kw, (d_in, d_out), dtype=jnp.float32) * 0.1
    b = jax.random.normal(kb, (d_out,), dtype=jnp.float32) * 0.1
    y_ref = jnp.einsum("nld,do->nlo", x, w, precision=HI) + b
    y = position_feed_forward(x, w, b)
    jax.block_until_ready(y)
    assert y.shape == (N, L, d_out)
    assert jnp.allclose(y, y_ref, atol=1e-5, rtol=1e-5)

    # 2) MXU path, weight fully resident; also the bf16-compute / bf16-output
    #    options (x is cast in-VMEM only — no extra HBM pass).
    N2, L2, d2i, d2o = 2, 64, 128, 128
    k1, k2, k3 = jax.random.split(jax.random.PRNGKey(1), 3)
    x2 = jax.random.normal(k1, (N2, L2, d2i), dtype=jnp.float32)
    w2 = jax.random.normal(k2, (d2i, d2o), dtype=jnp.float32) * 0.05
    b2 = jax.random.normal(k3, (d2o,), dtype=jnp.float32) * 0.05
    y2_ref = jnp.einsum("nld,do->nlo", x2, w2, precision=HI) + b2
    y2 = position_feed_forward(x2, w2, b2)
    jax.block_until_ready(y2)
    assert jnp.allclose(y2, y2_ref, atol=1e-3, rtol=1e-3)

    y2b = position_feed_forward(x2, w2, b2, compute_dtype=jnp.bfloat16,
                                out_dtype=jnp.bfloat16)
    jax.block_until_ready(y2b)
    assert y2b.dtype == jnp.bfloat16
    assert jnp.allclose(y2b.astype(jnp.float32), y2_ref, atol=1e-1, rtol=1e-1)

    # 3) Force small tiles to compile-test the K-tiled accumulator path and
    #    the ragged (masked) row tail on TPU.
    N3, L3, d3i, d3o = 2, 30, 256, 256
    k4, k5, k6 = jax.random.split(jax.random.PRNGKey(2), 3)
    x3 = jax.random.normal(k4, (N3, L3, d3i), dtype=jnp.float32)
    w3 = jax.random.normal(k5, (d3i, d3o), dtype=jnp.float32) * 0.05
    b3 = jax.random.normal(k6, (d3o,), dtype=jnp.float32) * 0.05
    y3_ref = jnp.einsum("nld,do->nlo", x3, w3, precision=HI) + b3
    y3 = position_feed_forward(x3, w3, b3, _force_tiles=(32, 128, 128))
    jax.block_until_ready(y3)
    assert jnp.allclose(y3, y3_ref, atol=1e-3, rtol=1e-3)

    print("KERNEL_OK")
</pallas_src>

<mosaic_0001>
module attributes {stable_mosaic.version = 11 : i64} {
  func.func @_pff_kernel_vpu(%arg0: i32, %arg1: i32, %arg2: memref<16x4xf32, #tpu.memory_space<vmem>>, %arg3: memref<4x128xf32, #tpu.memory_space<vmem>>, %arg4: memref<1x128xf32, #tpu.memory_space<vmem>>, %arg5: memref<16x128xf32, #tpu.memory_space<vmem>>) attributes {dimension_semantics = [#tpu.dimension_semantics<parallel>, #tpu.dimension_semantics<parallel>], iteration_bounds = array<i64: 1, 1>, scalar_prefetch = 0 : i64, scratch_operands = 0 : i64, tpu.core_type = #tpu.core_type<tc>, window_params = [{transform_indices = @transform_0, window_bounds = array<i64: 16, 4>}, {transform_indices = @transform_1, window_bounds = array<i64: 4, 128>}, {transform_indices = @transform_2, window_bounds = array<i64: 1, 128>}, {transform_indices = @transform_3, window_bounds = array<i64: 16, 128>}]} {
    %c0 = arith.constant 0 : index
    %c0_0 = arith.constant 0 : index
    %0 = vector.load %arg2[%c0, %c0_0] : memref<16x4xf32, #tpu.memory_space<vmem>>, vector<16x4xf32>
    %c0_1 = arith.constant 0 : index
    %c0_2 = arith.constant 0 : index
    %1 = vector.load %arg3[%c0_1, %c0_2] : memref<4x128xf32, #tpu.memory_space<vmem>>, vector<4x128xf32>
    %2 = vector.extract_strided_slice %0 {offsets = [0, 0], sizes = [16, 1], strides = [1, 1]} : vector<16x4xf32> to vector<16x1xf32>
    %3 = vector.extract_strided_slice %1 {offsets = [0, 0], sizes = [1, 128], strides = [1, 1]} : vector<4x128xf32> to vector<1x128xf32>
    %4 = vector.broadcast %2 : vector<16x1xf32> to vector<16x128xf32>
    %5 = vector.broadcast %3 : vector<1x128xf32> to vector<16x128xf32>
    %6 = arith.mulf %4, %5 : vector<16x128xf32>
    %7 = vector.extract_strided_slice %0 {offsets = [0, 1], sizes = [16, 1], strides = [1, 1]} : vector<16x4xf32> to vector<16x1xf32>
    %8 = vector.extract_strided_slice %1 {offsets = [1, 0], sizes = [1, 128], strides = [1, 1]} : vector<4x128xf32> to vector<1x128xf32>
    %9 = vector.broadcast %7 : vector<16x1xf32> to vector<16x128xf32>
    %10 = vector.broadcast %8 : vector<1x128xf32> to vector<16x128xf32>
    %11 = arith.mulf %9, %10 : vector<16x128xf32>
    %12 = arith.addf %6, %11 : vector<16x128xf32>
    %13 = vector.extract_strided_slice %0 {offsets = [0, 2], sizes = [16, 1], strides = [1, 1]} : vector<16x4xf32> to vector<16x1xf32>
    %14 = vector.extract_strided_slice %1 {offsets = [2, 0], sizes = [1, 128], strides = [1, 1]} : vector<4x128xf32> to vector<1x128xf32>
    %15 = vector.broadcast %13 : vector<16x1xf32> to vector<16x128xf32>
    %16 = vector.broadcast %14 : vector<1x128xf32> to vector<16x128xf32>
    %17 = arith.mulf %15, %16 : vector<16x128xf32>
    %18 = arith.addf %12, %17 : vector<16x128xf32>
    %19 = vector.extract_strided_slice %0 {offsets = [0, 3], sizes = [16, 1], strides = [1, 1]} : vector<16x4xf32> to vector<16x1xf32>
    %20 = vector.extract_strided_slice %1 {offsets = [3, 0], sizes = [1, 128], strides = [1, 1]} : vector<4x128xf32> to vector<1x128xf32>
    %21 = vector.broadcast %19 : vector<16x1xf32> to vector<16x128xf32>
    %22 = vector.broadcast %20 : vector<1x128xf32> to vector<16x128xf32>
    %23 = arith.mulf %21, %22 : vector<16x128xf32>
    %24 = arith.addf %18, %23 : vector<16x128xf32>
    %c0_3 = arith.constant 0 : index
    %c0_4 = arith.constant 0 : index
    %25 = vector.load %arg4[%c0_3, %c0_4] : memref<1x128xf32, #tpu.memory_space<vmem>>, vector<1x128xf32>
    %26 = vector.broadcast %25 : vector<1x128xf32> to vector<16x128xf32>
    %27 = arith.addf %24, %26 : vector<16x128xf32>
    %c0_5 = arith.constant 0 : index
    %c0_6 = arith.constant 0 : index
    %28 = vector.load %arg5[%c0_5, %c0_6] : memref<16x128xf32, #tpu.memory_space<vmem>>, vector<16x128xf32>
    tpu.vector_store %arg5[%c0_5, %c0_6], %27 {strides = array<i32>} : memref<16x128xf32, #tpu.memory_space<vmem>>, vector<16x128xf32>,
    return
  }
  func.func @transform_0(%arg0: i32, %arg1: i32) -> (i32, i32) {
    %c0_i32 = arith.constant 0 : i32
    %c0_i32_0 = arith.constant 0 : i32
    return %arg0, %c0_i32 : i32, i32
  }
  func.func @transform_1(%arg0: i32, %arg1: i32) -> (i32, i32) {
    %c0_i32 = arith.constant 0 : i32
    %c0_i32_0 = arith.constant 0 : i32
    return %c0_i32, %arg1 : i32, i32
  }
  func.func @transform_2(%arg0: i32, %arg1: i32) -> (i32, i32) {
    %c0_i32 = arith.constant 0 : i32
    %c0_i32_0 = arith.constant 0 : i32
    return %c0_i32, %arg1 : i32, i32
  }
  func.func @transform_3(%arg0: i32, %arg1: i32) -> (i32, i32) {
    %c0_i32 = arith.constant 0 : i32
    return %arg0, %arg1 : i32, i32
  }
}

</mosaic_0001>

<bundles_post_ra>
// kernel: tpu_custom_call.1
= control target key start
LH: loop header
LB: loop body
LE: loop exit
PB: predicated region body
PF: predicated region fallthrough
CT: control target
= control target key end

     0   :  { %v147_v1 = vmov 1   ;;  %v148_v2 = vmov 0   ;;  %s198_s0 = inlined_call_operand.vmem [shape: f32[16,4], index: 0, kind: input, shape index: {}]   ;;  %s199_s1 = inlined_call_operand.vmem [shape: f32[4,128], index: 1, kind: input, shape index: {}]   ;;  %s200_s2 = inlined_call_operand.vmem [shape: f32[1,128], index: 2, kind: input, shape index: {}]   ;;  %s201_s3 = inlined_call_operand.hbm [shape: f32[16,128], index: 3, kind: output, shape index: {}]  }
   0x1   :  { %v15_v0 = vld [vmem:[%s198_s0] sm:$0xff]  ;;  %118 = vset.pattern.permute.xlu1 %v147_v1  ;;  %117 = vset.pattern.permute.xlu0 %v148_v2 }
   0x2   :  { %8 = vsyncpa [#allocation3], 0  ;;  %35 = vperm.xlu1 %118, %v15_v0   ;;  %20 = vperm.xlu0 %117, %v15_v0   ;;  %v16_v3 = vld [vmem:[%s198_s0 + $0x8] sm:$0xff]  ;;  %v149_v4 = vmov 2   ;;  %v150_v5 = vmov 3   ;;  %v28_v6 = vlaneseq }
   0x3   :  { %v17_v12 = vld [vmem:[%s199_s1] sm:$0xf]  ;;  %s151_s1 = smov [#allocation2]  }
   0x4   :  { %v29_v7 = vshrl.u32 %v28_v6, 7  ;;  %s98_s17 = sshll.u32 %s151_s1, 4  ;;  %v109_v37 = vld [vmem:[%s200_s2] ss:$0 sm:$0xff]  ;;  %s99_s17 = int_to_ptr.vmem [resolvable:$true] %s98_s17 }
   0x5   :  { %s123_s20 = scalar_lea.vmem %s99_s17, 256  ;;  %p128_p1 = scmp.lt.s32.totalorder %s99_s17, %s99_s17 }
   0x6   :  { %39 = vperm.xlu1 %118, %v16_v3   ;;  %25 = vperm.xlu0 %117, %v16_v3   ;;  %v44_v10 = vsub.s32 1, %v29_v7  ;;  %v30_v11 = vsub.s32 0, %v29_v7  ;;  %v60_v13 = vsub.s32 2, %v29_v7  ;;  %v76_v19 = vsub.s32 3, %v29_v7  ;;  %p124_p0 = scmp.ne.s32.totalorder %s99_s17, %s123_s20  ;;  %p129_p2 = scmp.lt.s32.totalorder %s123_s20, %s123_s20 }
   0x8   :  { %v45_v16 = vrot.slane %v17_v12, %v44_v10  ;;  %v31_v17 = vrot.slane %v17_v12, %v30_v11  ;;  %v61_v18 = vrot.slane %v17_v12, %v60_v13  ;;  %v77_v28 = vrot.slane %v17_v12, %v76_v19  ;;  %p130_p3 = por %p129_p2, %p128_p1 }
   0xa   :  { %120 = vset.pattern.permute.xlu1 %v149_v4  ;;  %119 = vset.pattern.permute.xlu0 %v149_v4  ;;  %p131_p4 = pnand %p130_p3, %p124_p0 }
   0xb   :  { %55 = vperm.xlu1 %120, %v16_v3   ;;  %51 = vperm.xlu0 %119, %v15_v0  }
   0xf   :  { %121 = vset.pattern.permute.xlu1 %v150_v5  ;;  %122 = vset.pattern.permute.xlu0 %v150_v5 }
  0x10   :  { %67 = vperm.xlu1 %121, %v15_v0   ;;  %71 = vperm.xlu0 %122, %v16_v3  }
  0x81   :  { %v36_v8 = vpop.permute.xlu1 %35  ;;  %v21_v9 = vpop.permute.xlu0 %20 }
  0x82   :  { %v46_v20 = vmul.f32 %v45_v16, %v36_v8  ;;  %v32_v21 = vmul.f32 %v31_v17, %v21_v9 }
  0x84   :  { %v48_v29 = vadd.f32 %v46_v20, %v32_v21 }
  0x85   :  { %v40_v14 = vpop.permute.xlu1 %39  ;;  %v26_v15 = vpop.permute.xlu0 %25 }
  0x86   :  { %v47_v22 = vmul.f32 %v45_v16, %v40_v14  ;;  %v33_v23 = vmul.f32 %v31_v17, %v26_v15 }
  0x88   :  { %v49_v30 = vadd.f32 %v47_v22, %v33_v23 }
  0x8a   :  { %v56_v24 = vpop.permute.xlu1 %55  ;;  %v52_v25 = vpop.permute.xlu0 %51 }
  0x8b   :  { %v63_v26 = vmul.f32 %v61_v18, %v56_v24  ;;  %v62_v27 = vmul.f32 %v61_v18, %v52_v25 }
  0x8d   :  { %v65_v33 = vadd.f32 %v63_v26, %v49_v30  ;;  %v64_v34 = vadd.f32 %v62_v27, %v48_v29 }
  0x8f   :  { %v68_v31 = vpop.permute.xlu1 %67  ;;  %v72_v32 = vpop.permute.xlu0 %71 }
  0x90   :  { %v78_v35 = vmul.f32 %v77_v28, %v68_v31  ;;  %v79_v36 = vmul.f32 %v77_v28, %v72_v32 }
  0x92   :  { %v80_v38 = vadd.f32 %v78_v35, %v64_v34  ;;  %v81_v39 = vadd.f32 %v79_v36, %v65_v33 }
  0x94   :  { %v89_v40 = vadd.f32 %v109_v37, %v80_v38  ;;  %v90_v41 = vadd.f32 %v109_v37, %v81_v39 }
  0x96   :  { %91 = vst [vmem:[#allocation2] sm:$0xff] %v89_v40  ;;  %92 = vst [vmem:[#allocation2 + $0x8] sm:$0xff] %v90_v41 }
  0x97   :  { %134 = shalt.err (!%p131_p4)
}
  0x98   :  { %s135_s23 = scalar_lea.hbm %s201_s3, 256 }
  0x99   :  { %p136_p5 = scmp.ne.s32.totalorder %s201_s3, %s135_s23  ;;  %p139_p6 = scmp.lt.u32.totalorder %s135_s23, %s201_s3 }
  0x9b   :  { %p141_p7 = pnand %p139_p6, %p136_p5 }
  0x9d   :  { %144 = shalt.err (!%p141_p7)
}
  0x9e   :  { %s152_s27 = smov 128   ;;  %s153_s28 = smov 8  }
  0x9f   :  { %104 = dma.vmem_to_hbm [thread:$0]  %s99_s17, 256, %s201_s3, [#allocation3], %s152_s27, %s152_s27, %s153_s28  }
  0xa0   :  { %145 = dma.done.wait [#allocation3], 256  }
  0xa1   :  { %146 = vsyncadd [#allocation3], 4294967040 }
  0xa2   :  { %108 = vsyncpa [#allocation3], 1 }

</bundles_post_ra>
